<compile_context>
chip_gen: v5e
topology: v5e:2x2
jax: 0.10.0
libtpu: 0.0.40
codegen_flags: <defaults>
</compile_context>

<pallas_src>
import functools

import jax
import jax.numpy as jnp
from jax.experimental import pallas as pl
from jax.experimental.pallas import tpu as pltpu


# ----------------------------------------------------------------------------
# Pallas kernel: identity pass-through (the DataManager's entire tensor path).
# ----------------------------------------------------------------------------
def _passthrough_kernel(x_ref, o_ref):
    o_ref[...] = x_ref[...]


@functools.partial(
    jax.jit, static_argnames=("lane_width", "max_tile_bytes", "alias_input")
)
def pallas_passthrough(
    x: jax.Array,
    *,
    lane_width: int = 1024,          # multiple of 128 (lane-dense wide slab)
    max_tile_bytes: int = 2 * 1024 * 1024,  # 2 MiB tile -> 8 MiB resident (2x in + 2x out)
    alias_input: bool = True,
) -> jax.Array:
    """Copy a batch through VMEM via a tiled, HBM-bandwidth-bound Pallas kernel."""
    orig_shape = x.shape
    total = x.size
    itemsize = jnp.dtype(x.dtype).itemsize

    # ---- derive tiling from the array size (not a fixed tiny default) ------
    rows = pl.cdiv(total, lane_width)
    # Largest multiple-of-8 row count whose tile stays under the VMEM budget.
    tile_rows_cap = max(8, ((max_tile_bytes // (lane_width * itemsize)) // 8) * 8)

    if rows <= tile_rows_cap:
        # Whole array as a single full-extent block: no pipelining overhead.
        tile_rows = rows
        rows_padded = rows
        grid = (1,)
    else:
        # Multi-step grid: (tile_rows, lane_width) blocks satisfy (8, 128);
        # multiple steps let the "parallel" axis shard across v7x's 2 TCs.
        tile_rows = tile_rows_cap
        rows_padded = pl.cdiv(rows, tile_rows) * tile_rows
        grid = (rows_padded // tile_rows,)

    padded_total = rows_padded * lane_width

    # ---- ragged sizes: pad instead of asserting ----------------------------
    flat = x.reshape(-1)
    if padded_total != total:
        flat = jnp.pad(flat, (0, padded_total - total))
    x2d = flat.reshape(rows_padded, lane_width)

    out2d = pl.pallas_call(
        _passthrough_kernel,
        out_shape=jax.ShapeDtypeStruct((rows_padded, lane_width), x2d.dtype),
        grid=grid,
        in_specs=[pl.BlockSpec((tile_rows, lane_width), lambda i: (i, 0))],
        out_specs=pl.BlockSpec((tile_rows, lane_width), lambda i: (i, 0)),
        # In-place copy declaration; full benefit requires the caller to donate.
        input_output_aliases={0: 0} if alias_input else {},
        compiler_params=pltpu.CompilerParams(
            dimension_semantics=("parallel",),
        ),
    )(x2d)

    return out2d.reshape(-1)[:total].reshape(orig_shape)


# ----------------------------------------------------------------------------
# JAX-side DataManager mirroring the PyTorch module's semantics.
# ----------------------------------------------------------------------------
class DataManager:
    """Abstract data manager (JAX port). forward() is blank, as in the reference."""

    includes_time: bool = False

    def __init__(self):
        self.train_count = 0
        self.eval_count = 0
        # No learnable parameters in the abstract base class.
        # TODO(synk): setup_train/setup_eval/next_train/next_eval/next_eval_image,
        # get_*_rays_per_batch, get_datapath are abstract and perform no tensor
        # compute here; concrete subclasses supply them.

    def forward(self):
        # Exactly mirrors the PyTorch module: blank forward.
        raise NotImplementedError

    def iter_train(self):
        self.train_count = 0

    def iter_eval(self):
        self.eval_count = 0

    def get_param_groups(self):
        return {}

    # Demonstration of the data path a concrete subclass would take:
    # next_train hands a batch of ground-truth pixels through the Pallas
    # pass-through kernel (identity semantics, HBM-bandwidth bound).
    def next_train_passthrough(self, batch_images: jax.Array, **kw) -> jax.Array:
        self.train_count += 1
        return pallas_passthrough(batch_images, **kw)


if __name__ == "__main__":
    key = jax.random.PRNGKey(0)
    k0, k1, k2 = jax.random.split(key, 3)

    dm = DataManager()

    # Verify forward() semantics match the PyTorch module (blank forward).
    try:
        dm.forward()
        raise AssertionError("forward() should have raised NotImplementedError")
    except NotImplementedError:
        pass

    # --- small batch: single full-array block, grid=(1,) --------------------
    x = jax.random.normal(k0, (2, 4, 16, 16), dtype=jnp.float32)  # NCHW
    out = jax.block_until_ready(dm.next_train_passthrough(x))
    assert out.shape == x.shape and out.dtype == x.dtype
    assert bool(jnp.array_equal(out, x))
    assert dm.train_count == 1

    # --- larger batch, artificially small tile budget: exercises the tiled
    #     multi-step (grid > 1) path with (8, 1024) blocks --------------------
    x_tiled = jax.random.normal(k1, (2, 4, 64, 64), dtype=jnp.float32)
    out_tiled = jax.block_until_ready(
        dm.next_train_passthrough(x_tiled, max_tile_bytes=32 * 1024)
    )
    assert bool(jnp.array_equal(out_tiled, x_tiled))

    # --- ragged shape (not a multiple of 128): exercises the padding path ----
    x_ragged = jax.random.normal(k2, (1, 3, 10, 10), dtype=jnp.float32)
    out_ragged = jax.block_until_ready(dm.next_train_passthrough(x_ragged))
    assert out_ragged.shape == x_ragged.shape
    assert bool(jnp.array_equal(out_ragged, x_ragged))

    assert dm.train_count == 3
    dm.iter_train()
    assert dm.train_count == 0
    assert dm.get_param_groups() == {}

    print("KERNEL_OK")
</pallas_src>

<mosaic_0001>
module attributes {stable_mosaic.version = 11 : i64} {
  func.func @_passthrough_kernel(%arg0: i32, %arg1: memref<2x1024xf32, #tpu.memory_space<vmem>>, %arg2: memref<2x1024xf32, #tpu.memory_space<vmem>>) attributes {dimension_semantics = [#tpu.dimension_semantics<parallel>], iteration_bounds = array<i64: 1>, scalar_prefetch = 0 : i64, scratch_operands = 0 : i64, tpu.core_type = #tpu.core_type<tc>, window_params = [{transform_indices = @transform_0, window_bounds = array<i64: 2, 1024>}, {transform_indices = @transform_1, window_bounds = array<i64: 2, 1024>}]} {
    %c0 = arith.constant 0 : index
    %c0_0 = arith.constant 0 : index
    %0 = vector.load %arg1[%c0, %c0_0] : memref<2x1024xf32, #tpu.memory_space<vmem>>, vector<2x1024xf32>
    %c0_1 = arith.constant 0 : index
    %c0_2 = arith.constant 0 : index
    %1 = vector.load %arg2[%c0_1, %c0_2] : memref<2x1024xf32, #tpu.memory_space<vmem>>, vector<2x1024xf32>
    tpu.vector_store %arg2[%c0_1, %c0_2], %0 {strides = array<i32>} : memref<2x1024xf32, #tpu.memory_space<vmem>>, vector<2x1024xf32>,
    return
  }
  func.func @transform_0(%arg0: i32) -> (i32, i32) {
    %c0_i32 = arith.constant 0 : i32
    %c0_i32_0 = arith.constant 0 : i32
    return %arg0, %c0_i32 : i32, i32
  }
  func.func @transform_1(%arg0: i32) -> (i32, i32) {
    %c0_i32 = arith.constant 0 : i32
    %c0_i32_0 = arith.constant 0 : i32
    return %arg0, %c0_i32 : i32, i32
  }
}

</mosaic_0001>

<bundles_post_ra>
// kernel: pallas_passthrough.1
= control target key start
LH: loop header
LB: loop body
LE: loop exit
PB: predicated region body
PF: predicated region fallthrough
CT: control target
= control target key end

     0   :  { %s38_s0 = inlined_call_operand.vmem [shape: f32[2,1024], index: 0, kind: input, shape index: {}, may-alias: {0,1}]   ;;  %s39_s1 = inlined_call_operand.vmem [shape: f32[2,1024], index: 1, kind: output, shape index: {}, may-alias: {0,1}]  }
   0x1   :  { %v8_v0 = vld [vmem:[%s38_s0] sm:$0xff]  ;;  %v9_v1 = vld [vmem:[%s38_s0 + $0x8] sm:$0xff] }
   0x2   :  { %10 = vst [vmem:[%s39_s1] sm:$0xff] %v8_v0 }
   0x3   :  { %11 = vst [vmem:[%s39_s1 + $0x8] sm:$0xff] %v9_v1 }

</bundles_post_ra>
